<compile_context>
chip_gen: v7x
topology: tpu7x:2x2x1
jax: 0.10.0
libtpu: 0.0.40
codegen_flags: <defaults>
</compile_context>

<pallas_src>
import jax
import jax.numpy as jnp
from jax.experimental import pallas as pl
from jax.experimental.pallas import tpu as pltpu


def base_forward(x: jax.Array) -> jax.Array:
    """Exact equivalent of Base.forward: the identity. No kernel launched."""
    return x


def _dma_copy_kernel(x_hbm, o_hbm, sem):
    # One HBM -> HBM DMA; no VMEM staging, no grid.
    cp = pltpu.make_async_copy(x_hbm, o_hbm, sem)
    cp.start()
    cp.wait()


@jax.jit
def base_forward_copy(x: jax.Array) -> jax.Array:
    """Identity forward materialized as a fresh HBM buffer via one async DMA."""
    return pl.pallas_call(
        _dma_copy_kernel,
        out_shape=jax.ShapeDtypeStruct(x.shape, x.dtype),
        in_specs=[pl.BlockSpec(memory_space=pl.ANY)],
        out_specs=pl.BlockSpec(memory_space=pl.ANY),
        scratch_shapes=[pltpu.SemaphoreType.DMA(())],
    )(x)


# TODO(synk): train_step / report_scores_min / make_optimizer / make_criterion
# are host-side training utilities (losses, metrics, optimizer, scheduler),
# not part of the forward graph, so they are intentionally not kernels.


if __name__ == "__main__":
    key = jax.random.PRNGKey(0)
    # Shapes consistent with module defaults: numTimesteps=24, input_size=36.
    B, T, F = 2, 24, 36
    x = jax.random.normal(key, (B, T, F), dtype=jnp.float32)

    # Primary path: identity (no kernel).
    y = jax.block_until_ready(base_forward(x))
    assert y.shape == x.shape and y.dtype == x.dtype
    assert bool(jnp.array_equal(y, x))

    # Materialized-copy path: single HBM->HBM DMA Pallas kernel.
    y_copy = jax.block_until_ready(base_forward_copy(x))
    assert y_copy.shape == x.shape and y_copy.dtype == x.dtype
    assert bool(jnp.array_equal(y_copy, x))

    print("KERNEL_OK")
</pallas_src>

<mosaic_0001>
module attributes {stable_mosaic.version = 11 : i64} {
  func.func @_dma_copy_kernel(%arg0: memref<2x24x36xf32, #tpu.memory_space<any>>, %arg1: memref<2x24x36xf32, #tpu.memory_space<any>>, %arg2: memref<!tpu.dma_semaphore, #tpu.memory_space<semaphore_mem>>) attributes {dimension_semantics = [], scalar_prefetch = 0 : i64, scratch_operands = 1 : i64, tpu.core_type = #tpu.core_type<tc>} {
    tpu.enqueue_dma source(%arg0 : memref<2x24x36xf32, #tpu.memory_space<any>>) target(%arg1 : memref<2x24x36xf32, #tpu.memory_space<any>>) target_semaphore(%arg2 : memref<!tpu.dma_semaphore, #tpu.memory_space<semaphore_mem>>)
    tpu.wait_dma2 semaphore(%arg2 : memref<!tpu.dma_semaphore, #tpu.memory_space<semaphore_mem>>) src(%arg0 : memref<2x24x36xf32, #tpu.memory_space<any>>) dst(%arg1 : memref<2x24x36xf32, #tpu.memory_space<any>>)
    return
  }
}

</mosaic_0001>

<bundles_post_ra>
// kernel: base_forward_copy.1
= control target key start
LH: loop header
LB: loop body
LE: loop exit
PB: predicated region body
PF: predicated region fallthrough
CT: control target
= control target key end

     0   :  { %s35_s6 = smov [#allocation2]   ;;  %s36_s7 = smov [#allocation3]   ;;  %s54_s0 = inlined_call_operand.hbm [shape: f32[2,24,36], index: 0, kind: input, shape index: {}]   ;;  %s55_s1 = inlined_call_operand.hbm [shape: f32[2,24,36], index: 1, kind: output, shape index: {}]  }
   0x1   :  { %s37_s8 = smov 0  }
   0x2   :  { %18 = dma.general %s54_s0, 768, %s55_s1, %s35_s6, %s36_s7, [#allocation4], %s37_s8, 0  }
   0x3   :  { %33 = dma.done.wait [#allocation2], 768 }
   0x4   :  { %34 = vsyncadd [#allocation2], 4294966528 }
   0x5   :  { %23 = vsyncmov [#allocation2] }
   0x8   :  { %s24_s13 = vpop.sfrf %23 }
   0x9   :  { %p29_p0 = scmp.ne.s32.totalorder %s24_s13, 0 }
   0xb   :  { %28 = shalt.err (%p29_p0)  }

</bundles_post_ra>
